<compile_context>
chip_gen: v7x
topology: tpu7x:2x2x1
jax: 0.10.0
libtpu: 0.0.40
codegen_flags: <defaults>
</compile_context>

<pallas_src>
from functools import partial

import jax
import jax.numpy as jnp
from jax import lax
from jax.experimental import pallas as pl
from jax.experimental.pallas import tpu as pltpu

_LANE = 128
_SUBLANE = 8
_TB_CAP = 2048                         # rows per batch tile
_VMEM_INPUT_BUDGET = 16 * 1024 * 1024  # bytes for the double-buffered input pair
_MIN_TN_BYTES = 2048                   # >= 2 KiB contiguous per DMA row chunk
_VMEM_LIMIT_BYTES = 48 * 1024 * 1024   # under v7x's 64 MiB physical VMEM


def _round_up(v, m):
    return -(-v // m) * m


def _cdiv(a, b):
    return -(-a // b)


def _choose_tiles(B, N, itemsize, tb=None, tn=None):
    """Pick (tb, nb, tn, nk): batch tile/count and reduction tile/count."""
    # Minimum / maximum lane-chunk width when the reduction axis is tiled.
    tn_min = max(_LANE, _round_up(_MIN_TN_BYTES // itemsize, _LANE))
    tn_cap = max(tn_min, (_VMEM_INPUT_BUDGET // (2 * 512 * itemsize)) // _LANE * _LANE)

    if tn is None:
        tn = N if N <= tn_cap else tn_cap
    if tn < N:
        tn = _round_up(min(max(tn, tn_min), tn_cap), _LANE)   # lane-aligned chunks
        if tn >= N:
            tn, nk = N, 1
        else:
            nk = _cdiv(N, tn)
    else:
        tn, nk = N, 1                                         # single chunk == full row

    # Batch (sublane) tile: largest multiple of 8 inside the VMEM budget, but
    # capped at ceil(B/2) so v7x's two TensorCores both get batch tiles.
    if tb is None:
        tb = _VMEM_INPUT_BUDGET // (2 * max(tn, 1) * itemsize)
    tb_two_cores = _round_up(_cdiv(B, 2), _SUBLANE)
    tb = max(_SUBLANE, min(tb, _TB_CAP, tb_two_cores, _round_up(B, _SUBLANE)))
    tb = tb // _SUBLANE * _SUBLANE
    nb = _cdiv(B, tb)
    tb = _round_up(_cdiv(B, nb), _SUBLANE)       # shrink tb to minimize edge overshoot
    nb = _cdiv(B, tb)
    return tb, nb, tn, nk


def _lane_iota():
    return lax.broadcasted_iota(jnp.int32, (1, _LANE), 1)


def _finalize_store(load_slab, o_ref, tb):
    """Collapse (tb, 128) f32 lane-partials into a lane-dense (1, 1, tb) row.

    Works in 128-row slabs so the transpose + halving tree never holds more
    than ~32 live vregs (no spills at large tb).
    """
    for r0 in range(0, tb, _LANE):
        sz = min(_LANE, tb - r0)
        t = load_slab(r0, sz).T                  # (128, sz): native XLU transpose
        r = _LANE
        while r > 1:                             # static halving tree (VPU only)
            r //= 2
            t = t[:r, :] * t[r:, :]
        o_ref[:, :, r0:r0 + sz] = (1.0 - t).astype(o_ref.dtype).reshape(1, 1, sz)


def _or_kernel_single(x_ref, o_ref, *, block_n):
    """nk == 1 fast path: complement, fold, lane-reduce and store in one pass."""
    tb = x_ref.shape[0]
    n_full = block_n // _LANE
    rem = block_n % _LANE

    folded = None
    for c in range(n_full):
        neg = 1.0 - x_ref[:, c * _LANE:(c + 1) * _LANE].astype(jnp.float32)
        folded = neg if folded is None else folded * neg

    if rem and n_full:
        # Ragged tail (< 128 lanes): re-read the *last* 128 columns (overlapping
        # the previous chunk) and neutralize the already-counted lanes, so the
        # tail contributes exactly once (fixes the old tail^128 bug).
        tail = 1.0 - x_ref[:, block_n - _LANE:block_n].astype(jnp.float32)
        tail = jnp.where(_lane_iota() >= _LANE - rem, tail, jnp.float32(1.0))
        folded = folded * tail
    elif rem:
        # block_n < 128 (tiny predicate count): sequential column fold, injected
        # into lane 0 only; the other 127 lanes stay at the identity.
        neg = 1.0 - x_ref[...].astype(jnp.float32)            # (tb, block_n)
        row = neg[:, 0:1]
        for j in range(1, block_n):
            row = row * neg[:, j:j + 1]                       # (tb, 1)
        folded = jnp.where(_lane_iota() == 0, row, jnp.float32(1.0))

    _finalize_store(lambda r0, sz: folded[r0:r0 + sz, :], o_ref, tb)


def _or_kernel_multi(x_ref, o_ref, acc_ref, *, n_valid, block_n, ragged):
    """nk > 1: grid = (batch_tiles, reduction_tiles); reduction axis innermost."""
    k = pl.program_id(1)
    nk = pl.num_programs(1)
    tb = acc_ref.shape[0]

    def fold(mask_cols):
        # Complement + fold the 128-lane sub-chunks of this block elementwise on
        # the VPU; all cross-lane work happens once per batch tile (finalize).
        folded = None
        for c in range(block_n // _LANE):
            neg = 1.0 - x_ref[:, c * _LANE:(c + 1) * _LANE].astype(jnp.float32)
            if mask_cols:
                col = k * block_n + c * _LANE + _lane_iota()
                neg = jnp.where(col < n_valid, neg, jnp.float32(1.0))
            folded = neg if folded is None else folded * neg
        return folded

    # First chunk of a new batch tile: overwrite the accumulator directly
    # (no ones-init store + reload round trip through VMEM).
    @pl.when(k == 0)
    def _():
        acc_ref[...] = fold(False)

    if ragged:
        @pl.when(jnp.logical_and(k > 0, k < nk - 1))
        def _():
            acc_ref[...] = acc_ref[...] * fold(False)

        @pl.when(k == nk - 1)
        def _():
            # Only the last chunk pays for the column mask.
            acc_ref[...] = acc_ref[...] * fold(True)
            _finalize_store(lambda r0, sz: acc_ref[r0:r0 + sz, :], o_ref, tb)
    else:
        @pl.when(k > 0)
        def _():
            acc_ref[...] = acc_ref[...] * fold(False)

        @pl.when(k == nk - 1)
        def _():
            _finalize_store(lambda r0, sz: acc_ref[r0:r0 + sz, :], o_ref, tb)


def _reference(x):
    # Pure-JAX reference mirroring the PyTorch module exactly.
    neg = 1.0 - x
    p = jnp.prod(neg, axis=1)
    return (1.0 - p).reshape(-1, 1)


def or_layer(x, *, tb=None, tn=None, force_pallas=False):
    """Fuzzy OR over axis 1 (OrLayer.forward): x [B, N] -> [B, 1]."""
    B, N = x.shape

    # Toy workloads: launch + per-step overhead dwarfs the work; let XLA fuse.
    if not force_pallas and B * N <= 4096:
        return _reference(x)

    itemsize = jnp.dtype(x.dtype).itemsize
    tb, nb, tn, nk = _choose_tiles(B, N, itemsize, tb=tb, tn=tn)

    out_shape = jax.ShapeDtypeStruct((nb, 1, tb), x.dtype)
    if nk == 1:
        kernel = partial(_or_kernel_single, block_n=tn)
        grid = (nb,)
        in_specs = [pl.BlockSpec((tb, tn), lambda i: (i, 0))]
        out_specs = pl.BlockSpec((1, 1, tb), lambda i: (i, 0, 0))
        scratch = []
        dims = ("parallel",)
    else:
        kernel = partial(_or_kernel_multi, n_valid=N, block_n=tn,
                         ragged=(N % tn != 0))
        grid = (nb, nk)                                   # reduction axis innermost
        in_specs = [pl.BlockSpec((tb, tn), lambda i, k: (i, k))]
        out_specs = pl.BlockSpec((1, 1, tb), lambda i, k: (i, 0, 0))
        scratch = [pltpu.VMEM((tb, _LANE), jnp.float32)]
        dims = ("parallel", "arbitrary")

    out = pl.pallas_call(
        kernel,
        out_shape=out_shape,
        grid_spec=pltpu.PrefetchScalarGridSpec(
            num_scalar_prefetch=0,
            grid=grid,
            in_specs=in_specs,
            out_specs=out_specs,
            scratch_shapes=scratch,
        ),
        compiler_params=pltpu.CompilerParams(
            dimension_semantics=dims,
            vmem_limit_bytes=_VMEM_LIMIT_BYTES,
        ),
    )(x)

    # (nb, 1, tb) lane-dense rows flatten row-major back to per-example order;
    # rows >= B come from the partial batch-edge block and are sliced off.
    return out.reshape(-1, 1)[:B, :]


if __name__ == "__main__":
    key = jax.random.PRNGKey(0)
    ks = jax.random.split(key, 5)

    tests = [
        # (shape, scale, kwargs): scale keeps prod(1-x) away from underflow
        ((8, 32), 0.10, {}),               # tiny, single block, N < 128 lane-0 path
        ((50, 130), 0.02, {}),             # unaligned B + ragged <128-lane tail
        ((272, 384), 0.005, {}),           # multi batch tiles, multi-slab finalize
        ((48, 1280), 0.002, dict(tn=512)), # tiled reduction, ragged last chunk
        ((64, 1024), 0.002, dict(tn=512)), # tiled reduction, exact chunks
    ]

    for k_i, ((b, n), s, kw) in zip(ks, tests):
        x = jax.random.uniform(k_i, (b, n), dtype=jnp.float32) * s
        got = jax.block_until_ready(or_layer(x, force_pallas=True, **kw))
        want = _reference(x)
        assert got.shape == (b, 1), got.shape
        err = jnp.max(jnp.abs(got - want))
        assert jnp.allclose(got, want, atol=1e-5, rtol=1e-5), (
            f"mismatch for shape {(b, n)}: max err {err}")

    print("KERNEL_OK")
</pallas_src>

<mosaic_0001>
module attributes {stable_mosaic.version = 11 : i64} {
  func.func @_or_kernel_single(%arg0: i32, %arg1: memref<8x32xf32, #tpu.memory_space<vmem>>, %arg2: memref<1x1x8xf32, #tpu.memory_space<vmem>>) attributes {dimension_semantics = [#tpu.dimension_semantics<parallel>], iteration_bounds = array<i64: 1>, scalar_prefetch = 0 : i64, scratch_operands = 0 : i64, tpu.core_type = #tpu.core_type<tc>, window_params = [{transform_indices = @transform_0, window_bounds = array<i64: 8, 32>}, {transform_indices = @transform_1, window_bounds = array<i64: 1, 1, 8>}]} {
    %c0 = arith.constant 0 : index
    %c0_0 = arith.constant 0 : index
    %0 = vector.load %arg1[%c0, %c0_0] : memref<8x32xf32, #tpu.memory_space<vmem>>, vector<8x32xf32>
    %cst = arith.constant 1.000000e+00 : f32
    %1 = vector.broadcast %cst : f32 to vector<8x32xf32>
    %2 = arith.subf %1, %0 : vector<8x32xf32>
    %3 = vector.extract_strided_slice %2 {offsets = [0, 0], sizes = [8, 1], strides = [1, 1]} : vector<8x32xf32> to vector<8x1xf32>
    %4 = vector.extract_strided_slice %2 {offsets = [0, 1], sizes = [8, 1], strides = [1, 1]} : vector<8x32xf32> to vector<8x1xf32>
    %5 = arith.mulf %3, %4 : vector<8x1xf32>
    %6 = vector.extract_strided_slice %2 {offsets = [0, 2], sizes = [8, 1], strides = [1, 1]} : vector<8x32xf32> to vector<8x1xf32>
    %7 = arith.mulf %5, %6 : vector<8x1xf32>
    %8 = vector.extract_strided_slice %2 {offsets = [0, 3], sizes = [8, 1], strides = [1, 1]} : vector<8x32xf32> to vector<8x1xf32>
    %9 = arith.mulf %7, %8 : vector<8x1xf32>
    %10 = vector.extract_strided_slice %2 {offsets = [0, 4], sizes = [8, 1], strides = [1, 1]} : vector<8x32xf32> to vector<8x1xf32>
    %11 = arith.mulf %9, %10 : vector<8x1xf32>
    %12 = vector.extract_strided_slice %2 {offsets = [0, 5], sizes = [8, 1], strides = [1, 1]} : vector<8x32xf32> to vector<8x1xf32>
    %13 = arith.mulf %11, %12 : vector<8x1xf32>
    %14 = vector.extract_strided_slice %2 {offsets = [0, 6], sizes = [8, 1], strides = [1, 1]} : vector<8x32xf32> to vector<8x1xf32>
    %15 = arith.mulf %13, %14 : vector<8x1xf32>
    %16 = vector.extract_strided_slice %2 {offsets = [0, 7], sizes = [8, 1], strides = [1, 1]} : vector<8x32xf32> to vector<8x1xf32>
    %17 = arith.mulf %15, %16 : vector<8x1xf32>
    %18 = vector.extract_strided_slice %2 {offsets = [0, 8], sizes = [8, 1], strides = [1, 1]} : vector<8x32xf32> to vector<8x1xf32>
    %19 = arith.mulf %17, %18 : vector<8x1xf32>
    %20 = vector.extract_strided_slice %2 {offsets = [0, 9], sizes = [8, 1], strides = [1, 1]} : vector<8x32xf32> to vector<8x1xf32>
    %21 = arith.mulf %19, %20 : vector<8x1xf32>
    %22 = vector.extract_strided_slice %2 {offsets = [0, 10], sizes = [8, 1], strides = [1, 1]} : vector<8x32xf32> to vector<8x1xf32>
    %23 = arith.mulf %21, %22 : vector<8x1xf32>
    %24 = vector.extract_strided_slice %2 {offsets = [0, 11], sizes = [8, 1], strides = [1, 1]} : vector<8x32xf32> to vector<8x1xf32>
    %25 = arith.mulf %23, %24 : vector<8x1xf32>
    %26 = vector.extract_strided_slice %2 {offsets = [0, 12], sizes = [8, 1], strides = [1, 1]} : vector<8x32xf32> to vector<8x1xf32>
    %27 = arith.mulf %25, %26 : vector<8x1xf32>
    %28 = vector.extract_strided_slice %2 {offsets = [0, 13], sizes = [8, 1], strides = [1, 1]} : vector<8x32xf32> to vector<8x1xf32>
    %29 = arith.mulf %27, %28 : vector<8x1xf32>
    %30 = vector.extract_strided_slice %2 {offsets = [0, 14], sizes = [8, 1], strides = [1, 1]} : vector<8x32xf32> to vector<8x1xf32>
    %31 = arith.mulf %29, %30 : vector<8x1xf32>
    %32 = vector.extract_strided_slice %2 {offsets = [0, 15], sizes = [8, 1], strides = [1, 1]} : vector<8x32xf32> to vector<8x1xf32>
    %33 = arith.mulf %31, %32 : vector<8x1xf32>
    %34 = vector.extract_strided_slice %2 {offsets = [0, 16], sizes = [8, 1], strides = [1, 1]} : vector<8x32xf32> to vector<8x1xf32>
    %35 = arith.mulf %33, %34 : vector<8x1xf32>
    %36 = vector.extract_strided_slice %2 {offsets = [0, 17], sizes = [8, 1], strides = [1, 1]} : vector<8x32xf32> to vector<8x1xf32>
    %37 = arith.mulf %35, %36 : vector<8x1xf32>
    %38 = vector.extract_strided_slice %2 {offsets = [0, 18], sizes = [8, 1], strides = [1, 1]} : vector<8x32xf32> to vector<8x1xf32>
    %39 = arith.mulf %37, %38 : vector<8x1xf32>
    %40 = vector.extract_strided_slice %2 {offsets = [0, 19], sizes = [8, 1], strides = [1, 1]} : vector<8x32xf32> to vector<8x1xf32>
    %41 = arith.mulf %39, %40 : vector<8x1xf32>
    %42 = vector.extract_strided_slice %2 {offsets = [0, 20], sizes = [8, 1], strides = [1, 1]} : vector<8x32xf32> to vector<8x1xf32>
    %43 = arith.mulf %41, %42 : vector<8x1xf32>
    %44 = vector.extract_strided_slice %2 {offsets = [0, 21], sizes = [8, 1], strides = [1, 1]} : vector<8x32xf32> to vector<8x1xf32>
    %45 = arith.mulf %43, %44 : vector<8x1xf32>
    %46 = vector.extract_strided_slice %2 {offsets = [0, 22], sizes = [8, 1], strides = [1, 1]} : vector<8x32xf32> to vector<8x1xf32>
    %47 = arith.mulf %45, %46 : vector<8x1xf32>
    %48 = vector.extract_strided_slice %2 {offsets = [0, 23], sizes = [8, 1], strides = [1, 1]} : vector<8x32xf32> to vector<8x1xf32>
    %49 = arith.mulf %47, %48 : vector<8x1xf32>
    %50 = vector.extract_strided_slice %2 {offsets = [0, 24], sizes = [8, 1], strides = [1, 1]} : vector<8x32xf32> to vector<8x1xf32>
    %51 = arith.mulf %49, %50 : vector<8x1xf32>
    %52 = vector.extract_strided_slice %2 {offsets = [0, 25], sizes = [8, 1], strides = [1, 1]} : vector<8x32xf32> to vector<8x1xf32>
    %53 = arith.mulf %51, %52 : vector<8x1xf32>
    %54 = vector.extract_strided_slice %2 {offsets = [0, 26], sizes = [8, 1], strides = [1, 1]} : vector<8x32xf32> to vector<8x1xf32>
    %55 = arith.mulf %53, %54 : vector<8x1xf32>
    %56 = vector.extract_strided_slice %2 {offsets = [0, 27], sizes = [8, 1], strides = [1, 1]} : vector<8x32xf32> to vector<8x1xf32>
    %57 = arith.mulf %55, %56 : vector<8x1xf32>
    %58 = vector.extract_strided_slice %2 {offsets = [0, 28], sizes = [8, 1], strides = [1, 1]} : vector<8x32xf32> to vector<8x1xf32>
    %59 = arith.mulf %57, %58 : vector<8x1xf32>
    %60 = vector.extract_strided_slice %2 {offsets = [0, 29], sizes = [8, 1], strides = [1, 1]} : vector<8x32xf32> to vector<8x1xf32>
    %61 = arith.mulf %59, %60 : vector<8x1xf32>
    %62 = vector.extract_strided_slice %2 {offsets = [0, 30], sizes = [8, 1], strides = [1, 1]} : vector<8x32xf32> to vector<8x1xf32>
    %63 = arith.mulf %61, %62 : vector<8x1xf32>
    %64 = vector.extract_strided_slice %2 {offsets = [0, 31], sizes = [8, 1], strides = [1, 1]} : vector<8x32xf32> to vector<8x1xf32>
    %65 = arith.mulf %63, %64 : vector<8x1xf32>
    %66 = tpu.iota {dimensions = array<i32: 1>} : vector<1x128xi32>
    %c0_i32 = arith.constant 0 : i32
    %67 = vector.broadcast %c0_i32 : i32 to vector<1x128xi32>
    %68 = arith.cmpi eq, %66, %67 : vector<1x128xi32>
    %cst_1 = arith.constant 1.000000e+00 : f32
    %69 = vector.shape_cast %68 : vector<1x128xi1> to vector<1x128xi1>
    %70 = vector.broadcast %69 : vector<1x128xi1> to vector<8x128xi1>
    %71 = vector.shape_cast %65 : vector<8x1xf32> to vector<8x1xf32>
    %72 = vector.broadcast %71 : vector<8x1xf32> to vector<8x128xf32>
    %73 = vector.broadcast %cst_1 : f32 to vector<8x128xf32>
    %74 = arith.select %70, %72, %73 : vector<8x128xi1>, vector<8x128xf32>
    %75 = tpu.transpose %74, [1, 0] : vector<8x128xf32> -> vector<128x8xf32>
    %76 = vector.extract_strided_slice %75 {offsets = [0, 0], sizes = [64, 8], strides = [1, 1]} : vector<128x8xf32> to vector<64x8xf32>
    %77 = vector.extract_strided_slice %75 {offsets = [64, 0], sizes = [64, 8], strides = [1, 1]} : vector<128x8xf32> to vector<64x8xf32>
    %78 = arith.mulf %76, %77 : vector<64x8xf32>
    %79 = vector.extract_strided_slice %78 {offsets = [0, 0], sizes = [32, 8], strides = [1, 1]} : vector<64x8xf32> to vector<32x8xf32>
    %80 = vector.extract_strided_slice %78 {offsets = [32, 0], sizes = [32, 8], strides = [1, 1]} : vector<64x8xf32> to vector<32x8xf32>
    %81 = arith.mulf %79, %80 : vector<32x8xf32>
    %82 = vector.extract_strided_slice %81 {offsets = [0, 0], sizes = [16, 8], strides = [1, 1]} : vector<32x8xf32> to vector<16x8xf32>
    %83 = vector.extract_strided_slice %81 {offsets = [16, 0], sizes = [16, 8], strides = [1, 1]} : vector<32x8xf32> to vector<16x8xf32>
    %84 = arith.mulf %82, %83 : vector<16x8xf32>
    %85 = vector.extract_strided_slice %84 {offsets = [0, 0], sizes = [8, 8], strides = [1, 1]} : vector<16x8xf32> to vector<8x8xf32>
    %86 = vector.extract_strided_slice %84 {offsets = [8, 0], sizes = [8, 8], strides = [1, 1]} : vector<16x8xf32> to vector<8x8xf32>
    %87 = arith.mulf %85, %86 : vector<8x8xf32>
    %88 = vector.extract_strided_slice %87 {offsets = [0, 0], sizes = [4, 8], strides = [1, 1]} : vector<8x8xf32> to vector<4x8xf32>
    %89 = vector.extract_strided_slice %87 {offsets = [4, 0], sizes = [4, 8], strides = [1, 1]} : vector<8x8xf32> to vector<4x8xf32>
    %90 = arith.mulf %88, %89 : vector<4x8xf32>
    %91 = vector.extract_strided_slice %90 {offsets = [0, 0], sizes = [2, 8], strides = [1, 1]} : vector<4x8xf32> to vector<2x8xf32>
    %92 = vector.extract_strided_slice %90 {offsets = [2, 0], sizes = [2, 8], strides = [1, 1]} : vector<4x8xf32> to vector<2x8xf32>
    %93 = arith.mulf %91, %92 : vector<2x8xf32>
    %94 = vector.extract_strided_slice %93 {offsets = [0, 0], sizes = [1, 8], strides = [1, 1]} : vector<2x8xf32> to vector<1x8xf32>
    %95 = vector.extract_strided_slice %93 {offsets = [1, 0], sizes = [1, 8], strides = [1, 1]} : vector<2x8xf32> to vector<1x8xf32>
    %96 = arith.mulf %94, %95 : vector<1x8xf32>
    %cst_2 = arith.constant 1.000000e+00 : f32
    %97 = vector.broadcast %cst_2 : f32 to vector<1x8xf32>
    %98 = arith.subf %97, %96 : vector<1x8xf32>
    %99 = vector.shape_cast %98 : vector<1x8xf32> to vector<1x1x8xf32>
    %c0_3 = arith.constant 0 : index
    %c0_4 = arith.constant 0 : index
    %c0_5 = arith.constant 0 : index
    %100 = vector.load %arg2[%c0_3, %c0_4, %c0_5] : memref<1x1x8xf32, #tpu.memory_space<vmem>>, vector<1x1x8xf32>
    tpu.vector_store %arg2[%c0_3, %c0_4, %c0_5], %99 {strides = array<i32>} : memref<1x1x8xf32, #tpu.memory_space<vmem>>, vector<1x1x8xf32>,
    return
  }
  func.func @transform_0(%arg0: i32) -> (i32, i32) {
    %c0_i32 = arith.constant 0 : i32
    %c0_i32_0 = arith.constant 0 : i32
    return %arg0, %c0_i32 : i32, i32
  }
  func.func @transform_1(%arg0: i32) -> (i32, i32, i32) {
    %c0_i32 = arith.constant 0 : i32
    %c0_i32_0 = arith.constant 0 : i32
    %c0_i32_1 = arith.constant 0 : i32
    return %arg0, %c0_i32, %c0_i32_0 : i32, i32, i32
  }
}

</mosaic_0001>

<bundles_post_ra>
// kernel: tpu_custom_call.1
= control target key start
LH: loop header
LB: loop body
LE: loop exit
PB: predicated region body
PF: predicated region fallthrough
CT: control target
= control target key end

     0   :  { %6 = vsyncpa [#allocation3], 0  ;;  %s425_s0 = inlined_call_operand.hbm [shape: f32[8,32], index: 0, kind: input, shape index: {}]   ;;  %s426_s1 = inlined_call_operand.hbm [shape: f32[1,1,8], index: 1, kind: output, shape index: {}]  }
   0x1   :  { %7 = vsyncpa [#allocation4], 0  ;;  %s321_s6 = smov [#allocation2]   ;;  %s273_s10 = scalar_lea.hbm %s425_s0, 128 }
   0x2   :  { %s14_s7 = sshll.u32 %s321_s6, 4  ;;  %p274_p0 = scmp.ne.s32.totalorder %s425_s0, %s273_s10  ;;  %s15_s7 = int_to_ptr.vmem [resolvable:$true] %s14_s7 }
   0x3   :  { %p277_p1 = scmp.lt.u32.totalorder %s273_s10, %s425_s0 }
   0x5   :  { %p279_p2 = pnand %p277_p1, %p274_p0 }
   0x7   :  { %282 = shalt.err (!%p279_p2)
}
   0x8   :  { %s283_s15 = scalar_lea.vmem %s15_s7, 128  ;;  %p288_p4 = scmp.lt.s32.totalorder %s15_s7, %s15_s7 }
   0x9   :  { %p284_p3 = scmp.ne.s32.totalorder %s15_s7, %s283_s15  ;;  %p289_p5 = scmp.lt.s32.totalorder %s283_s15, %s283_s15 }
   0xb   :  { %p290_p6 = por %p289_p5, %p288_p4 }
   0xd   :  { %p291_p7 = pnand %p290_p6, %p284_p3 }
   0xf   :  { %294 = shalt.err (!%p291_p7)
}
  0x10   :  { %17 = dma.hbm_to_vmem [thread:$0]  %s425_s0, 128, %s15_s7, [#allocation3]  }
  0x11   :  { %317 = dma.done.wait [#allocation3], 128  }
  0x12   :  { %318 = vsyncadd [#allocation3], 4294967168  ;;  %v21_v0 = vld [vmem:[#allocation2] sm:$0xff]  ;;  %s322_s18 = smov 127   ;;  %s323_s19 = smov 125   ;;  %v348_v2 = vmov 0  }
  0x13   :  { %v377_v1 = vsub.f32 1.0, %v21_v0  ;;  %s324_s20 = smov 126   ;;  %s325_s21 = smov 124   ;;  %271 = vset.pattern.permute.xlu1 %v348_v2  ;;  %vm219_vm1 = vcmask 57344  }
  0x14   :  { %s326_s22 = smov 123   ;;  %s327_s0 = smov 122  }
  0x15   :  { %24 = vrot.lane.b32.xlu0 %v377_v1, %s322_s18  ;;  %32 = vrot.lane.b32.xlu1 %v377_v1, %s323_s19  ;;  %s328_s23 = smov 121   ;;  %s329_s24 = smov 120  }
  0x16   :  { %s330_s25 = smov 119   ;;  %s331_s26 = smov 118  }
  0x17   :  { %s332_s27 = smov 117   ;;  %s333_s28 = smov 116  }
  0x18   :  { %s334_s29 = smov 115   ;;  %s335_s30 = smov 114  }
  0x19   :  { %28 = vrot.lane.b32.xlu0 %v377_v1, %s324_s20  ;;  %36 = vrot.lane.b32.xlu1 %v377_v1, %s325_s21  ;;  %s336_s2 = smov 113   ;;  %s337_s3 = smov 112  }
  0x1a   :  { %s338_s4 = smov 111   ;;  %s339_s5 = smov 110  }
  0x1b   :  { %s340_s6 = smov 109   ;;  %s341_s7 = smov 108  }
  0x1c   :  { %s342_s8 = smov 107   ;;  %s343_s9 = smov 106  }
  0x1d   :  { %40 = vrot.lane.b32.xlu0 %v377_v1, %s326_s22  ;;  %44 = vrot.lane.b32.xlu1 %v377_v1, %s327_s0  ;;  %s344_s10 = smov 105   ;;  %s345_s11 = smov 104  }
  0x1e   :  { %s346_s12 = smov 103   ;;  %s347_s13 = smov 102  }
  0x1f   :  { %s349_s14 = smov 101   ;;  %s350_s15 = smov 100  }
  0x20   :  { %s351_s16 = smov 99   ;;  %s352_s17 = smov 98  }
  0x21   :  { %48 = vrot.lane.b32.xlu0 %v377_v1, %s328_s23  ;;  %52 = vrot.lane.b32.xlu1 %v377_v1, %s329_s24  ;;  %s353_s18 = smov 97   ;;  %s354_s19 = smov [#allocation5]  }
  0x22   :  { %s227_s20 = sshll.u32 %s354_s19, 4  ;;  %s228_s20 = int_to_ptr.vmem [resolvable:$true] %s227_s20 }
  0x23   :  { %s295_s21 = scalar_lea.vmem %s228_s20, 16  ;;  %s299_s22 = scalar_lea.vmem %s228_s20, 32 }
  0x24   :  { %p296_p8 = scmp.ne.s32.totalorder %s228_s20, %s295_s21  ;;  %p300_p9 = scmp.lt.s32.totalorder %s228_s20, %s228_s20 }
  0x25   :  { %56 = vrot.lane.b32.xlu0 %v377_v1, %s330_s25  ;;  %60 = vrot.lane.b32.xlu1 %v377_v1, %s331_s26  ;;  %p301_p10 = scmp.lt.s32.totalorder %s299_s22, %s295_s21 }
  0x27   :  { %p302_p11 = por %p301_p10, %p300_p9 }
  0x29   :  { %64 = vrot.lane.b32.xlu0 %v377_v1, %s332_s27  ;;  %68 = vrot.lane.b32.xlu1 %v377_v1, %s333_s28  ;;  %p303_p12 = pnand %p302_p11, %p296_p8 }
  0x2d   :  { %72 = vrot.lane.b32.xlu0 %v377_v1, %s334_s29  ;;  %76 = vrot.lane.b32.xlu1 %v377_v1, %s335_s30 }
  0x31   :  { %80 = vrot.lane.b32.xlu0 %v377_v1, %s336_s2  ;;  %84 = vrot.lane.b32.xlu1 %v377_v1, %s337_s3 }
  0x35   :  { %88 = vrot.lane.b32.xlu0 %v377_v1, %s338_s4  ;;  %92 = vrot.lane.b32.xlu1 %v377_v1, %s339_s5 }
  0x39   :  { %96 = vrot.lane.b32.xlu0 %v377_v1, %s340_s6  ;;  %100 = vrot.lane.b32.xlu1 %v377_v1, %s341_s7 }
  0x3d   :  { %104 = vrot.lane.b32.xlu0 %v377_v1, %s342_s8  ;;  %108 = vrot.lane.b32.xlu1 %v377_v1, %s343_s9 }
  0x41   :  { %112 = vrot.lane.b32.xlu0 %v377_v1, %s344_s10  ;;  %116 = vrot.lane.b32.xlu1 %v377_v1, %s345_s11 }
  0x45   :  { %120 = vrot.lane.b32.xlu0 %v377_v1, %s346_s12  ;;  %124 = vrot.lane.b32.xlu1 %v377_v1, %s347_s13 }
  0x49   :  { %128 = vrot.lane.b32.xlu0 %v377_v1, %s349_s14  ;;  %132 = vrot.lane.b32.xlu1 %v377_v1, %s350_s15 }
  0x4d   :  { %136 = vrot.lane.b32.xlu0 %v377_v1, %s351_s16  ;;  %140 = vrot.lane.b32.xlu1 %v377_v1, %s352_s17 }
  0x51   :  { %144 = vrot.lane.b32.xlu0 %v377_v1, %s353_s18 }
  0x87   :  { %v25_v3 = vpop.permute.xlu0 %24  ;;  %v33_v4 = vpop.permute.xlu1 %32 }
  0x88   :  { %v27_v5 = vmul.f32 %v25_v3, %v377_v1  ;;  %v148_v1 = vlaneseq }
  0x8a   :  { %v149_v3 = vand.u32 127, %v148_v1 }
  0x8b   :  { %v29_v6 = vpop.permute.xlu0 %28  ;;  %v37_v7 = vpop.permute.xlu1 %36 }
  0x8c   :  { %v31_v8 = vmul.f32 %v29_v6, %v27_v5  ;;  %vm150_vm0 = vcmp.eq.s32.totalorder %v149_v3, 0 }
  0x8e   :  { %v35_v9 = vmul.f32 %v33_v4, %v31_v8 }
  0x8f   :  { %v41_v10 = vpop.permute.xlu0 %40  ;;  %v45_v11 = vpop.permute.xlu1 %44 }
  0x90   :  { %v39_v12 = vmul.f32 %v37_v7, %v35_v9 }
  0x92   :  { %v43_v13 = vmul.f32 %v41_v10, %v39_v12 }
  0x93   :  { %v49_v14 = vpop.permute.xlu0 %48  ;;  %v53_v15 = vpop.permute.xlu1 %52 }
  0x94   :  { %v47_v16 = vmul.f32 %v45_v11, %v43_v13 }
  0x96   :  { %v51_v17 = vmul.f32 %v49_v14, %v47_v16 }
  0x97   :  { %v57_v18 = vpop.permute.xlu0 %56  ;;  %v61_v19 = vpop.permute.xlu1 %60 }
  0x98   :  { %v55_v20 = vmul.f32 %v53_v15, %v51_v17 }
  0x9a   :  { %v59_v21 = vmul.f32 %v57_v18, %v55_v20 }
  0x9b   :  { %v65_v22 = vpop.permute.xlu0 %64  ;;  %v69_v23 = vpop.permute.xlu1 %68 }
  0x9c   :  { %v63_v24 = vmul.f32 %v61_v19, %v59_v21 }
  0x9e   :  { %v67_v25 = vmul.f32 %v65_v22, %v63_v24 }
  0x9f   :  { %v73_v26 = vpop.permute.xlu0 %72  ;;  %v77_v27 = vpop.permute.xlu1 %76 }
  0xa0   :  { %v71_v28 = vmul.f32 %v69_v23, %v67_v25 }
  0xa2   :  { %v75_v29 = vmul.f32 %v73_v26, %v71_v28 }
  0xa3   :  { %v81_v30 = vpop.permute.xlu0 %80  ;;  %v85_v31 = vpop.permute.xlu1 %84 }
  0xa4   :  { %v79_v32 = vmul.f32 %v77_v27, %v75_v29 }
  0xa6   :  { %v83_v33 = vmul.f32 %v81_v30, %v79_v32 }
  0xa7   :  { %v89_v34 = vpop.permute.xlu0 %88  ;;  %v93_v35 = vpop.permute.xlu1 %92 }
  0xa8   :  { %v87_v36 = vmul.f32 %v85_v31, %v83_v33 }
  0xaa   :  { %v91_v37 = vmul.f32 %v89_v34, %v87_v36 }
  0xab   :  { %v97_v38 = vpop.permute.xlu0 %96  ;;  %v101_v39 = vpop.permute.xlu1 %100 }
  0xac   :  { %v95_v40 = vmul.f32 %v93_v35, %v91_v37 }
  0xae   :  { %v99_v41 = vmul.f32 %v97_v38, %v95_v40 }
  0xaf   :  { %v105_v42 = vpop.permute.xlu0 %104  ;;  %v109_v43 = vpop.permute.xlu1 %108 }
  0xb0   :  { %v103_v44 = vmul.f32 %v101_v39, %v99_v41 }
  0xb2   :  { %v107_v45 = vmul.f32 %v105_v42, %v103_v44 }
  0xb3   :  { %v113_v46 = vpop.permute.xlu0 %112  ;;  %v117_v47 = vpop.permute.xlu1 %116 }
  0xb4   :  { %v111_v48 = vmul.f32 %v109_v43, %v107_v45 }
  0xb6   :  { %v115_v49 = vmul.f32 %v113_v46, %v111_v48 }
  0xb7   :  { %v121_v50 = vpop.permute.xlu0 %120  ;;  %v125_v51 = vpop.permute.xlu1 %124 }
  0xb8   :  { %v119_v52 = vmul.f32 %v117_v47, %v115_v49 }
  0xba   :  { %v123_v53 = vmul.f32 %v121_v50, %v119_v52 }
  0xbb   :  { %v129_v54 = vpop.permute.xlu0 %128  ;;  %v133_v55 = vpop.permute.xlu1 %132 }
  0xbc   :  { %v127_v56 = vmul.f32 %v125_v51, %v123_v53 }
  0xbe   :  { %v131_v57 = vmul.f32 %v129_v54, %v127_v56 }
  0xbf   :  { %v137_v58 = vpop.permute.xlu0 %136  ;;  %v141_v60 = vpop.permute.xlu1 %140 }
  0xc0   :  { %v135_v59 = vmul.f32 %v133_v55, %v131_v57 }
  0xc2   :  { %v139_v61 = vmul.f32 %v137_v58, %v135_v59 }
  0xc3   :  { %v145_v62 = vpop.permute.xlu0 %144 }
  0xc4   :  { %v143_v63 = vmul.f32 %v141_v60, %v139_v61 }
  0xc6   :  { %v147_v0 = vmul.f32 %v145_v62, %v143_v63 }
  0xc8   :  { %155 = vperm.xlu1 %271, %v147_v0  }
 0x147   :  { %v156_v4 = vpop.permute.xlu1 %155 }
 0x148   :  { %v158_v5 = vsel %vm150_vm0, %v156_v4, 1.0 }
 0x149   :  { %159 = vxpose.xlu0.b32.start.end [1/1] (short) %v158_v5, 128 }
 0x172   :  { %272 = vset.pattern.permute.xlu0 %v348_v2 }
 0x1c9   :  { %v175_v6 = vpop.trf.xlu0 }
 0x1cd   :  { %v176_v7 = vpop.trf.xlu0 }
 0x1d1   :  { %v177_v8 = vpop.trf.xlu0 }
 0x1d5   :  { %v178_v9 = vpop.trf.xlu0 }
 0x1d9   :  { %v179_v10 = vpop.trf.xlu0 }
 0x1dd   :  { %v180_v11 = vpop.trf.xlu0 }
 0x1e1   :  { %v181_v12 = vpop.trf.xlu0 }
 0x1e5   :  { %v182_v13 = vpop.trf.xlu0 }
 0x1e9   :  { %v183_v14 = vpop.trf.xlu0 }
 0x1ea   :  { %v191_v2 = vmul.f32 %v183_v14, %v175_v6 }
 0x1ed   :  { %v184_v15 = vpop.trf.xlu0 }
 0x1ee   :  { %v192_v26 = vmul.f32 %v184_v15, %v176_v7 }
 0x1f1   :  { %v185_v16 = vpop.trf.xlu0 }
 0x1f2   :  { %v193_v22 = vmul.f32 %v185_v16, %v177_v8 }
 0x1f5   :  { %v186_v17 = vpop.trf.xlu0 }
 0x1f6   :  { %v194_v27 = vmul.f32 %v186_v17, %v178_v9 }
 0x1f9   :  { %v187_v18 = vpop.trf.xlu0 }
 0x1fa   :  { %v195_v23 = vmul.f32 %v187_v18, %v179_v10 }
 0x1fc   :  { %v199_v30 = vmul.f32 %v195_v23, %v191_v2 }
 0x1fd   :  { %v188_v19 = vpop.trf.xlu0 }
 0x1fe   :  { %v196_v24 = vmul.f32 %v188_v19, %v180_v11 }
 0x200   :  { %v200_v31 = vmul.f32 %v196_v24, %v192_v26 }
 0x201   :  { %v189_v20 = vpop.trf.xlu0 }
 0x202   :  { %v197_v21 = vmul.f32 %v189_v20, %v181_v12 }
 0x204   :  { %v201_v28 = vmul.f32 %v197_v21, %v193_v22 }
 0x205   :  { %v190_v25 = vpop.trf.xlu0 }
 0x206   :  { %v198_v29 = vmul.f32 %v190_v25, %v182_v13  ;;  %v203_v33 = vmul.f32 %v201_v28, %v199_v30 }
 0x208   :  { %v202_v32 = vmul.f32 %v198_v29, %v194_v27 }
 0x20a   :  { %v204_v34 = vmul.f32 %v202_v32, %v200_v31 }
 0x20c   :  { %v205_v35 = vmul.f32 %v204_v34, %v203_v33 }
 0x20e   :  { %v207_v36 = vrot.slane %v205_v35, 4 }
 0x210   :  { %v209_v37 = vmul.f32 %v207_v36, %v205_v35 }
 0x212   :  { %v211_v38 = vrot.slane %v209_v37, 2 }
 0x214   :  { %v213_v39 = vmul.f32 %v211_v38, %v209_v37 }
 0x216   :  { %v215_v40 = vrot.slane %v213_v39, 1 }
 0x218   :  { %v217_v41 = vmul.f32 %v215_v40, %v213_v39 }
 0x21a   :  { %v218_v42 = vsub.f32 1.0, %v217_v41 }
 0x21c   :  { %220 = vst.msk [vmem:[#allocation5] sm:$0x1] %vm219_vm1, %v218_v42 }
 0x21d   :  { %306 = shalt.err (!%p303_p12)
}
 0x21e   :  { %s307_s24 = scalar_lea.hbm %s426_s1, 16 }
 0x21f   :  { %p308_p13 = scmp.ne.s32.totalorder %s426_s1, %s307_s24  ;;  %p311_p0 = scmp.lt.u32.totalorder %s307_s24, %s426_s1 }
 0x221   :  { %p313_p1 = pnand %p311_p0, %p308_p13 }
 0x223   :  { %316 = shalt.err (!%p313_p1)
}
 0x224   :  { %230 = dma.vmem_to_hbm [thread:$0]  %s228_s20, 16, %s426_s1, [#allocation4]  }
 0x225   :  { %319 = dma.done.wait [#allocation4], 16  }
 0x226   :  { %320 = vsyncadd [#allocation4], 4294967280 }
 0x227   :  { %234 = vsyncpa [#allocation3], 1 }
 0x228   :  { %235 = vsyncpa [#allocation4], 1 }

</bundles_post_ra>
